<compile_context>
chip_gen: v5e
topology: v5e:2x2
jax: 0.10.0
libtpu: 0.0.40
codegen_flags: <defaults>
</compile_context>

<pallas_src>
import functools

import jax
import jax.numpy as jnp
from jax import lax
from jax.experimental import pallas as pl
from jax.experimental.pallas import tpu as pltpu

# ~1 MiB per input block (dtype-aware clamp below). Measured 0.25-1 MiB blocks
# already reach ~85% of the HBM roofline; keep it small enough for v5e/v7x
# scoped-VMEM defaults with 2 inputs x 2 pipeline buffers.
_DEFAULT_BLOCK_BYTES = 1 << 20


def _boundary_sum_kernel(pc_ref, dc_ref, o_ref, *scratch, r_tile, r_total,
                         mask_last, single_step):
    """Partial sum of pc*dc for one batch chunk.

    single_step:
        pc_ref/dc_ref : (BB, R, C) - whole plane(s); o_ref written directly.
    multi-step:
        pc_ref/dc_ref : (r_tile, C) view of R-tile `mi` for batch `bi`.
        scratch[0]    : (8, C) f32 vreg-shaped accumulator.
    o_ref : (1, 1) per-chunk partial sum.
    """
    x = pc_ref[...]
    y = dc_ref[...]
    if x.dtype != jnp.float32:
        x = x.astype(jnp.float32)
    if y.dtype != jnp.float32:
        y = y.astype(jnp.float32)
    prod = x * y

    if single_step:
        # Whole plane in one block: no scratch, no init, no RMW.
        o_ref[...] = jnp.sum(prod).reshape(1, 1)
        return

    acc_ref = scratch[0]
    mi = pl.program_id(1)
    n_m = pl.num_programs(1)
    c_dim = prod.shape[-1]

    @pl.when(mi == 0)
    def _():
        acc_ref[...] = jnp.zeros_like(acc_ref)  # single (8, C) slab - negligible

    def _fold(p):
        # Fold sublane groups into the (8, C) accumulator shape: pure vreg adds
        # (no XLU); the single cross-lane reduction happens once at the end.
        return p.reshape(-1, 8, c_dim).sum(axis=0)

    if mask_last:
        is_last = mi == n_m - 1

        @pl.when(jnp.logical_not(is_last))
        def _():
            acc_ref[...] += _fold(prod)

        @pl.when(is_last)
        def _():
            # Only the remainder tile pays for iota + compare + select.
            row = mi * r_tile + lax.broadcasted_iota(
                jnp.int32, prod.shape, prod.ndim - 2)
            acc_ref[...] += _fold(jnp.where(row < r_total, prod, 0.0))
    else:
        acc_ref[...] += _fold(prod)

    @pl.when(mi == n_m - 1)
    def _():
        o_ref[...] = jnp.sum(acc_ref[...]).reshape(1, 1)


def boundary_loss(outputs_soft, gt_sdf, *, block_bytes=_DEFAULT_BLOCK_BYTES):
    """mean(outputs_soft[:, 1] * gt_sdf[:, 1]) via a Pallas TPU reduction."""
    assert outputs_soft.shape == gt_sdf.shape
    b, c, h, w = outputs_soft.shape
    assert c >= 2, "BoundaryLoss expects a channel dim with at least 2 channels"

    # Lane-dense view of the contiguous channel-1 plane when possible
    # (metadata-only reshape of a contiguous array: no HBM copy).
    p = h * w
    if p % 128 == 0:
        r_total, c_dim = p // 128, 128
        x4 = outputs_soft.reshape(b, c, r_total, c_dim)
        y4 = gt_sdf.reshape(b, c, r_total, c_dim)
    else:
        r_total, c_dim = h, w
        x4, y4 = outputs_soft, gt_sdf

    itemsize = max(jnp.dtype(x4.dtype).itemsize, jnp.dtype(y4.dtype).itemsize)
    max_elems = max(1, block_bytes // itemsize)
    rows_budget = max_elems // max(c_dim, 1)
    plane_elems = r_total * c_dim

    if r_total <= rows_budget or r_total <= 8:
        # ---- single-step path: whole plane per batch chunk, coalesce batches.
        single_step = True
        r_tile = r_total
        mask_last = False
        bb = 1
        for d in range(1, b + 1):
            if b % d == 0 and d * plane_elems <= max_elems:
                bb = d
        grid = (b // bb,)
        in_spec = pl.BlockSpec((bb, None, r_tile, c_dim),
                               lambda bo: (bo, 1, 0, 0))
        out_spec = pl.BlockSpec((None, 1, 1), lambda bo: (bo, 0, 0))
        scratch_shapes = ()
        dims = ("parallel",)
    else:
        # ---- multi-step path: stream R-tiles (multiple of 8 sublanes) per batch.
        single_step = False
        r_tile = max(8, min(r_total, (rows_budget // 8) * 8))
        grid = (b, pl.cdiv(r_total, r_tile))
        mask_last = (r_total % r_tile) != 0
        in_spec = pl.BlockSpec((None, None, r_tile, c_dim),
                               lambda bi, mi: (bi, 1, mi, 0))
        out_spec = pl.BlockSpec((None, 1, 1), lambda bi, mi: (bi, 0, 0))
        scratch_shapes = (pltpu.VMEM((8, c_dim), jnp.float32),)
        dims = ("parallel", "arbitrary")

    kernel = functools.partial(
        _boundary_sum_kernel, r_tile=r_tile, r_total=r_total,
        mask_last=mask_last, single_step=single_step)

    n_chunks = grid[0]
    partial_sums = pl.pallas_call(
        kernel,
        out_shape=jax.ShapeDtypeStruct((n_chunks, 1, 1), jnp.float32),
        grid_spec=pltpu.PrefetchScalarGridSpec(
            num_scalar_prefetch=0,
            grid=grid,
            in_specs=[in_spec, in_spec],
            out_specs=out_spec,
            scratch_shapes=scratch_shapes,
        ),
        compiler_params=pltpu.CompilerParams(dimension_semantics=dims),
    )(x4, y4)

    n_elems = b * h * w
    return (jnp.sum(partial_sums) / jnp.float32(n_elems)).astype(jnp.float32)


def _reference(outputs_soft, gt_sdf):
    return jnp.mean(outputs_soft[:, 1, ...] * gt_sdf[:, 1, ...])


if __name__ == "__main__":
    key = jax.random.PRNGKey(0)

    def make_inputs(key, shape):
        k1, k2 = jax.random.split(key)
        logits = jax.random.normal(k1, shape, dtype=jnp.float32)
        outputs_soft = jax.nn.softmax(logits, axis=1)
        gt_sdf = jax.random.normal(k2, shape, dtype=jnp.float32)
        return outputs_soft, gt_sdf

    # 1) Small canonical shape: lane-dense (h*w % 128 == 0), single-step,
    #    batch-coalesced path.
    k, key = jax.random.split(key)
    xs, ys = make_inputs(k, (2, 2, 16, 16))
    loss = boundary_loss(xs, ys)
    jax.block_until_ready(loss)
    ref = _reference(xs, ys)
    assert jnp.allclose(loss, ref, atol=1e-6, rtol=1e-6), ("case1", loss, ref)

    # 2) Lane-dense multi-tile path with a partial last R-tile (forced small
    #    block budget): h*w = 3840 -> R = 30, r_tile = 8, remainder 6.
    k, key = jax.random.split(key)
    xs, ys = make_inputs(k, (1, 2, 48, 80))
    loss = boundary_loss(xs, ys, block_bytes=8 * 128 * 4)
    jax.block_until_ready(loss)
    ref = _reference(xs, ys)
    assert jnp.allclose(loss, ref, atol=1e-6, rtol=1e-6), ("case2", loss, ref)

    # 3) Fallback layout (h*w % 128 != 0), multi-tile with partial last tile:
    #    R = 10, C = 12, r_tile = 8, remainder 2.
    k, key = jax.random.split(key)
    xs, ys = make_inputs(k, (2, 2, 10, 12))
    loss = boundary_loss(xs, ys, block_bytes=8 * 12 * 4)
    jax.block_until_ready(loss)
    ref = _reference(xs, ys)
    assert jnp.allclose(loss, ref, atol=1e-6, rtol=1e-6), ("case3", loss, ref)

    print("KERNEL_OK")
</pallas_src>

<mosaic_0001>
module attributes {stable_mosaic.version = 11 : i64} {
  func.func @_boundary_sum_kernel(%arg0: i32, %arg1: memref<2x1x2x128xf32, #tpu.memory_space<vmem>>, %arg2: memref<2x1x2x128xf32, #tpu.memory_space<vmem>>, %arg3: memref<1x1x1xf32, #tpu.memory_space<vmem>>) attributes {dimension_semantics = [#tpu.dimension_semantics<parallel>], iteration_bounds = array<i64: 1>, scalar_prefetch = 0 : i64, scratch_operands = 0 : i64, tpu.core_type = #tpu.core_type<tc>, window_params = [{transform_indices = @transform_0, window_bounds = array<i64: 2, 1, 2, 128>}, {transform_indices = @transform_1, window_bounds = array<i64: 2, 1, 2, 128>}, {transform_indices = @transform_2, window_bounds = array<i64: 1, 1, 1>}]} {
    %c0 = arith.constant 0 : index
    %c0_0 = arith.constant 0 : index
    %c0_1 = arith.constant 0 : index
    %c0_2 = arith.constant 0 : index
    %0 = vector.load %arg1[%c0, %c0_0, %c0_1, %c0_2] : memref<2x1x2x128xf32, #tpu.memory_space<vmem>>, vector<2x1x2x128xf32>
    %1 = vector.shape_cast %0 : vector<2x1x2x128xf32> to vector<2x2x128xf32>
    %c0_3 = arith.constant 0 : index
    %c0_4 = arith.constant 0 : index
    %c0_5 = arith.constant 0 : index
    %c0_6 = arith.constant 0 : index
    %2 = vector.load %arg2[%c0_3, %c0_4, %c0_5, %c0_6] : memref<2x1x2x128xf32, #tpu.memory_space<vmem>>, vector<2x1x2x128xf32>
    %3 = vector.shape_cast %2 : vector<2x1x2x128xf32> to vector<2x2x128xf32>
    %4 = arith.mulf %1, %3 : vector<2x2x128xf32>
    %5 = vector.shape_cast %4 : vector<2x2x128xf32> to vector<1x2x2x128xf32>
    %cst = arith.constant dense<0.000000e+00> : vector<1xf32>
    %6 = vector.multi_reduction <add>, %5, %cst [1, 2, 3] : vector<1x2x2x128xf32> to vector<1xf32>
    %7 = vector.shape_cast %6 : vector<1xf32> to vector<1x1x1x1xf32>
    %8 = vector.extract %7[0, 0, 0, 0] : f32 from vector<1x1x1x1xf32>
    %9 = vector.broadcast %8 : f32 to vector<1x1xf32>
    %c0_7 = arith.constant 0 : index
    %c0_8 = arith.constant 0 : index
    %c0_9 = arith.constant 0 : index
    %10 = vector.load %arg3[%c0_7, %c0_8, %c0_9] : memref<1x1x1xf32, #tpu.memory_space<vmem>>, vector<1x1x1xf32>
    %11 = vector.shape_cast %10 : vector<1x1x1xf32> to vector<1x1xf32>
    %12 = vector.shape_cast %9 : vector<1x1xf32> to vector<1x1x1xf32>
    tpu.vector_store %arg3[%c0_7, %c0_8, %c0_9], %12 {strides = array<i32>} : memref<1x1x1xf32, #tpu.memory_space<vmem>>, vector<1x1x1xf32>,
    return
  }
  func.func @transform_0(%arg0: i32) -> (i32, i32, i32, i32) {
    %c1_i32 = arith.constant 1 : i32
    %c0_i32 = arith.constant 0 : i32
    %c0_i32_0 = arith.constant 0 : i32
    %c0_i32_1 = arith.constant 0 : i32
    return %arg0, %c1_i32, %c0_i32, %c0_i32_0 : i32, i32, i32, i32
  }
  func.func @transform_1(%arg0: i32) -> (i32, i32, i32, i32) {
    %c1_i32 = arith.constant 1 : i32
    %c0_i32 = arith.constant 0 : i32
    %c0_i32_0 = arith.constant 0 : i32
    %c0_i32_1 = arith.constant 0 : i32
    return %arg0, %c1_i32, %c0_i32, %c0_i32_0 : i32, i32, i32, i32
  }
  func.func @transform_2(%arg0: i32) -> (i32, i32, i32) {
    %c0_i32 = arith.constant 0 : i32
    %c0_i32_0 = arith.constant 0 : i32
    %c0_i32_1 = arith.constant 0 : i32
    return %arg0, %c0_i32, %c0_i32_0 : i32, i32, i32
  }
}

</mosaic_0001>

<bundles_post_ra>
// kernel: tpu_custom_call.1
= control target key start
LH: loop header
LB: loop body
LE: loop exit
PB: predicated region body
PF: predicated region fallthrough
CT: control target
= control target key end

     0   :  { %7 = vsyncpa [#allocation3], 0  ;;  %s202_s0 = inlined_call_operand.hbm [shape: f32[2,2,2,128], index: 0, kind: input, shape index: {}]   ;;  %s203_s1 = inlined_call_operand.hbm [shape: f32[2,2,2,128], index: 1, kind: input, shape index: {}]   ;;  %s204_s2 = inlined_call_operand.hbm [shape: f32[1,1,1], index: 2, kind: output, shape index: {}]  }
   0x1   :  { %8 = vsyncpa [#allocation6], 0 }
   0x2   :  { %9 = vsyncpa [#allocation4], 0  ;;  %s14_s11 = scalar_lea.hbm %s202_s0, 2  ;;  %s172_s13 = smov [#allocation2]  }
   0x3   :  { %s15_s12 = sshll.u32 %s14_s11, 4  ;;  %s17_s14 = sshll.u32 %s172_s13, 4  ;;  %s16_s12 = int_to_ptr.hbm [resolvable:$true] %s15_s12  ;;  %s18_s14 = int_to_ptr.vmem [resolvable:$true] %s17_s14 }
   0x4   :  { %s28_s17 = scalar_lea.hbm %s203_s1, 2  ;;  %s173_s18 = smov 64  }
   0x5   :  { %s174_s19 = smov 32   ;;  %s175_s20 = smov 2  }
   0x6   :  { %23 = dma.hbm_to_vmem [thread:$0]  %s16_s12, 64, %s18_s14, [#allocation3], %s173_s18, %s174_s19, %s175_s20  }
   0x7   :  { %s29_s21 = sshll.u32 %s28_s17, 4  ;;  %s176_s22 = smov [#allocation5]   ;;  %s30_s21 = int_to_ptr.hbm [resolvable:$true] %s29_s21 }
   0x8   :  { %s31_s23 = sshll.u32 %s176_s22, 4  ;;  %s32_s23 = int_to_ptr.vmem [resolvable:$true] %s31_s23 }
   0x9   :  { %37 = dma.hbm_to_vmem [thread:$0]  %s30_s21, 64, %s32_s23, [#allocation6], %s173_s18, %s174_s19, %s175_s20  }
   0xa   :  { %166 = dma.done.wait [#allocation3], 64  }
   0xb   :  { %167 = vsyncadd [#allocation3], 4294967232 }
   0xc   :  { %168 = dma.done.wait [#allocation6], 64  }
   0xd   :  { %169 = vsyncadd [#allocation6], 4294967232  ;;  %vm52_vm0 = vcmask 1041408   ;;  %v46_v0 = vld [vmem:[#allocation2] sm:$0x3]  ;;  %s177_s0 = smov [#allocation7]  }
   0xe   :  { %v47_v1 = vld [vmem:[#allocation2 + $0x2] sm:$0x3]  ;;  %v48_v2 = vld [vmem:[#allocation5] sm:$0x3]  ;;  %v49_v3 = vld [vmem:[#allocation5 + $0x2] sm:$0x3] }
   0xf   :  { %v50_v4 = vmul.f32 %v48_v2, %v46_v0  ;;  %v51_v5 = vmul.f32 %v49_v3, %v47_v1  ;;  %s73_s1 = sshll.u32 %s177_s0, 4  ;;  %s75_s26 = sshll.u32 %s204_s2, 4  ;;  %vm66_vm1 = vcmask 0   ;;  %s74_s1 = int_to_ptr.vmem [resolvable:$true] %s73_s1  ;;  %s76_s26 = int_to_ptr.hbm [resolvable:$true] %s75_s26 }
  0x11   :  { %v53_v6 = vsel %vm52_vm0, %v50_v4, 0.0  ;;  %v54_v7 = vsel %vm52_vm0, %v51_v5, 0.0 }
  0x12   :  { %v55_v8 = vadd.f32 %v54_v7, %v53_v6 }
  0x14   :  { %56 = vadd.xlane.f32.xlu0 %v55_v8 }
  0x87   :  { %v57_v9 = vpop.xlane.xlu0 %56 }
  0x88   :  { %v58_v10 = vrot.slane %v57_v9, 4 }
  0x8a   :  { %v59_v11 = vadd.f32 %v58_v10, %v57_v9 }
  0x8c   :  { %v60_v12 = vrot.slane %v59_v11, 2 }
  0x8e   :  { %v61_v13 = vadd.f32 %v60_v12, %v59_v11 }
  0x90   :  { %v62_v14 = vrot.slane %v61_v13, 1 }
  0x92   :  { %v63_v15 = vadd.f32 %v62_v14, %v61_v13 }
  0x94   :  { %86 = vpush %v63_v15 }
  0xc5   :  { %s87_s27 = spop %86 }
  0xc6   :  { %v65_v16 = vstv %s87_s27 }
  0xc7   :  { %67 = vst.msk [vmem:[#allocation7] sm:$0x1] %vm66_vm1, %v65_v16 }
  0xc8   :  { %78 = dma.vmem_to_hbm [thread:$0]  %s74_s1, 16, %s76_s26, [#allocation4]  }
  0xc9   :  { %170 = dma.done.wait [#allocation4], 16  }
  0xca   :  { %171 = vsyncadd [#allocation4], 4294967280 }
  0xcb   :  { %83 = vsyncpa [#allocation3], 1 }
  0xcc   :  { %84 = vsyncpa [#allocation6], 1 }
  0xcd   :  { %85 = vsyncpa [#allocation4], 1 }

</bundles_post_ra>
